<compile_context>
chip_gen: v7x
topology: tpu7x:2x2x1
jax: 0.10.0
libtpu: 0.0.40
codegen_flags: <defaults>
</compile_context>

<pallas_src>
import functools

import jax
import jax.numpy as jnp
from jax.experimental import pallas as pl
from jax.experimental.pallas import tpu as pltpu


# ----------------------------------------------------------------------------
# Pallas kernel: full SelfAttention forward for one block of batch elements
# ----------------------------------------------------------------------------
def _self_attention_kernel(x_ref, w_ref, b_ref, wo_ref, y_ref,
                           *, block_b, cq, cv, hwp):
    """x_ref : [block_b, C, HW]   pixels in phase-major order (4 pool phases
                                  of HWp pixels each, contiguous on lanes)
       w_ref : [2*Cq+Cv, C]       fused [wk; wq; wv] 1x1-conv weights
       b_ref : [2*Cq+Cv + C, 1]   [bk; bq; bv; gamma*bo]
       wo_ref: [C, Cv]            gamma-scaled output 1x1-conv weight
       y_ref : [block_b, C, HW]   output, same phase-major pixel order
    """
    cqkv = 2 * cq + cv
    w_all = w_ref[...]                          # [2Cq+Cv, C]
    b_cat = b_ref[...]                          # [2Cq+Cv + C, 1]
    b_qkv = b_cat[:cqkv, :]                     # [2Cq+Cv, 1]
    b_o = b_cat[cqkv:, :]                       # [C, 1]   (already gamma-scaled)
    wo = wo_ref[...]                            # [C, Cv]  (already gamma-scaled)

    for i in range(block_b):                    # static unroll over batch block
        xf = x_ref[i]                           # [C, HW]  lane-dense

        # ---- fused k/q/v 1x1 convs: ONE MXU pass, bias added before the
        #      phase-max (constant across phases, commutes with max). --------
        t = jnp.dot(w_all, xf, preferred_element_type=jnp.float32) + b_qkv
        k = t[:cq, :]                           # [Cq, HW]
        qc = t[cq:2 * cq, :]                    # [Cq, HW]
        vc = t[2 * cq:, :]                      # [Cv, HW]

        # ---- 2x2 / stride-2 max-pool == max over the 4 phase chunks of the
        #      (phase-major) pixel axis. -------------------------------------
        q = jnp.maximum(
            jnp.maximum(qc[:, 0 * hwp:1 * hwp], qc[:, 1 * hwp:2 * hwp]),
            jnp.maximum(qc[:, 2 * hwp:3 * hwp], qc[:, 3 * hwp:4 * hwp]))   # [Cq, HWp]
        v = jnp.maximum(
            jnp.maximum(vc[:, 0 * hwp:1 * hwp], vc[:, 1 * hwp:2 * hwp]),
            jnp.maximum(vc[:, 2 * hwp:3 * hwp], vc[:, 3 * hwp:4 * hwp]))   # [Cv, HWp]

        # ---- attention scores: s[q_idx, k_idx] = <q[:, q_idx], k[:, k_idx]>,
        #      softmax over the key axis (lanes) == torch softmax(dim=-1). ---
        # NOTE: for large H*W tile the HWp axis as an 'arbitrary' grid axis
        # with a [Cv, HW] VMEM accumulator (column softmax is complete per
        # q-tile); unnecessary at these sizes.
        s = jax.lax.dot_general(q, k, (((0,), (0,)), ((), ())),
                                preferred_element_type=jnp.float32)        # [HWp, HW]
        s = s - jnp.max(s, axis=-1, keepdims=True)
        e = jnp.exp(s)
        p = e * pl.reciprocal(jnp.sum(e, axis=-1, keepdims=True), approx=True)

        # ---- weighted values + gamma-scaled output conv + residual. --------
        att = jnp.dot(v, p, preferred_element_type=jnp.float32)            # [Cv, HW]
        o = jnp.dot(wo, att, preferred_element_type=jnp.float32) + b_o     # [C, HW]
        y_ref[i] = xf + o                       # lane-dense (HW = mult. of 128)


# ----------------------------------------------------------------------------
# Wrapper: phase permutation + pallas_call
# ----------------------------------------------------------------------------
def self_attention_forward(x, params, *, block_b=None):
    """x: [B, C, H, W] float32 (NCHW, PyTorch layout)."""
    B, C, H, W = x.shape
    assert H % 2 == 0 and W % 2 == 0
    Cq = params["wq"].shape[0]          # C // 8
    Cv = params["wv"].shape[0]          # C // 2
    H2, W2 = H // 2, W // 2
    HW, HWp = H * W, H2 * W2
    cqkv = 2 * Cq + Cv

    # Batch block: keep >=2 grid steps (both v7x TensorCores busy), otherwise
    # pack several batch elements per step to amortize per-step overhead.
    if block_b is None:
        block_b = 1
        for cand in (8, 4, 2):
            if B % cand == 0 and B // cand >= 2:
                block_b = cand
                break
    assert B % block_b == 0

    # ---- layout glue (single XLA transpose each way) ------------------------
    # Phase-major pixel permutation, NCHW-native: pixel j = ph*HWp + (h2*W2+w2)
    # with ph = 2*(h%2) + (w%2).
    x_perm = (x.astype(jnp.float32)
              .reshape(B, C, H2, 2, W2, 2)
              .transpose(0, 1, 3, 5, 2, 4)
              .reshape(B, C, HW))                                   # [B, C, HW]

    gamma = params["gamma"][0]
    # Fused conv weights/biases; gamma folded into the output conv (exact:
    # x + gamma*(wo@att + bo) == x + (gamma*wo)@att + gamma*bo).
    w_all = jnp.concatenate([params["wk"], params["wq"], params["wv"]], axis=0)
    b_cat = jnp.concatenate([params["bk"], params["bq"], params["bv"],
                             gamma * params["bo"]], axis=0).reshape(-1, 1)
    wo_g = (gamma * params["wo"]).astype(jnp.float32)               # [C, Cv]

    kernel = functools.partial(_self_attention_kernel,
                               block_b=block_b, cq=Cq, cv=Cv, hwp=HWp)

    y_perm = pl.pallas_call(
        kernel,
        out_shape=jax.ShapeDtypeStruct((B, C, HW), jnp.float32),
        grid_spec=pltpu.PrefetchScalarGridSpec(
            num_scalar_prefetch=0,
            grid=(B // block_b,),
            in_specs=[
                pl.BlockSpec((block_b, C, HW), lambda b: (b, 0, 0)),  # x (phase order)
                pl.BlockSpec((cqkv, C), lambda b: (0, 0)),            # fused wk|wq|wv
                pl.BlockSpec((cqkv + C, 1), lambda b: (0, 0)),        # all biases
                pl.BlockSpec((C, Cv), lambda b: (0, 0)),              # gamma * wo
            ],
            out_specs=pl.BlockSpec((block_b, C, HW), lambda b: (b, 0, 0)),
        ),
        compiler_params=pltpu.CompilerParams(
            dimension_semantics=("parallel",),
            vmem_limit_bytes=32 * 1024 * 1024),
    )(x_perm, w_all, b_cat, wo_g)

    # Inverse phase permutation back to NCHW.
    y = (y_perm.reshape(B, C, 2, 2, H2, W2)
         .transpose(0, 1, 4, 2, 5, 3)
         .reshape(B, C, H, W))
    return y


# ----------------------------------------------------------------------------
# Parameters (mirroring the PyTorch module) and a pure-JAX reference
# ----------------------------------------------------------------------------
def init_self_attention_params(key, in_dim):
    """1x1-conv kernels stored as [C_out, C_in] matrices, biases as [C_out]."""
    cq, cv = in_dim // 8, in_dim // 2
    ks = jax.random.split(key, 8)

    def w(k, cout, cin):
        return (jax.random.normal(k, (cout, cin)) / jnp.sqrt(cin)).astype(jnp.float32)

    def b(k, cout):
        return (0.1 * jax.random.normal(k, (cout,))).astype(jnp.float32)

    return {
        "wq": w(ks[0], cq, in_dim), "bq": b(ks[1], cq),
        "wk": w(ks[2], cq, in_dim), "bk": b(ks[3], cq),
        "wv": w(ks[4], cv, in_dim), "bv": b(ks[5], cv),
        "wo": w(ks[6], in_dim, cv), "bo": b(ks[7], in_dim),
        # PyTorch initializes gamma to zero (output == input); a nonzero value
        # is used here so the attention path is actually exercised/tested.
        "gamma": jnp.array([0.5], dtype=jnp.float32),
    }


def self_attention_reference(x, params):
    """Pure-JAX port of the PyTorch forward (correctness check only)."""
    B, C, H, W = x.shape

    def conv1x1(t, w, b):
        return jnp.einsum("bchw,oc->bohw", t, w) + b[None, :, None, None]

    def maxpool2(t):
        Bb, Cc, Hh, Ww = t.shape
        return jnp.max(t.reshape(Bb, Cc, Hh // 2, 2, Ww // 2, 2), axis=(3, 5))

    q = maxpool2(conv1x1(x, params["wq"], params["bq"]))
    k = conv1x1(x, params["wk"], params["bk"])
    v = maxpool2(conv1x1(x, params["wv"], params["bv"]))

    qf = q.reshape(B, q.shape[1], -1)     # [B, Cq, HW/4]
    kf = k.reshape(B, k.shape[1], -1)     # [B, Cq, HW]
    vf = v.reshape(B, v.shape[1], -1)     # [B, Cv, HW/4]

    atte = jnp.einsum("bcq,bck->bqk", qf, kf)
    atte = jax.nn.softmax(atte, axis=-1)
    out = jnp.einsum("bcq,bqk->bck", vf, atte)
    out = out.reshape(B, -1, H, W)
    out = conv1x1(out, params["wo"], params["bo"])
    return x + params["gamma"][0] * out


if __name__ == "__main__":
    B, C, H, W = 2, 32, 16, 16            # in_dim=32 -> q/k dim 4, v dim 16

    key = jax.random.PRNGKey(0)
    kx, kp = jax.random.split(key)
    x = jax.random.normal(kx, (B, C, H, W), dtype=jnp.float32)
    params = init_self_attention_params(kp, C)

    fwd = jax.jit(self_attention_forward)
    out = jax.block_until_ready(fwd(x, params))

    ref = jax.block_until_ready(self_attention_reference(x, params))

    assert out.shape == (B, C, H, W), out.shape
    assert out.dtype == jnp.float32
    assert bool(jnp.all(jnp.isfinite(out)))
    # Loose-ish tolerance: kernel matmuls run on the MXU with an approx
    # reciprocal in the softmax; the reference uses XLA default-precision einsums.
    max_err = float(jnp.max(jnp.abs(out - ref)))
    assert max_err < 5e-2, max_err

    print("KERNEL_OK")
</pallas_src>

<mosaic_0001>
module attributes {stable_mosaic.version = 11 : i64} {
  func.func @_self_attention_kernel(%arg0: i32, %arg1: memref<1x32x256xf32, #tpu.memory_space<vmem>>, %arg2: memref<24x32xf32, #tpu.memory_space<vmem>>, %arg3: memref<56x1xf32, #tpu.memory_space<vmem>>, %arg4: memref<32x16xf32, #tpu.memory_space<vmem>>, %arg5: memref<1x32x256xf32, #tpu.memory_space<vmem>>) attributes {dimension_semantics = [#tpu.dimension_semantics<parallel>], iteration_bounds = array<i64: 2>, scalar_prefetch = 0 : i64, scratch_operands = 0 : i64, tpu.core_type = #tpu.core_type<tc>, window_params = [{transform_indices = @transform_0, window_bounds = array<i64: 1, 32, 256>}, {pipeline_mode = #tpu.pipeline_mode<synchronous>, transform_indices = @transform_1, window_bounds = array<i64: 24, 32>}, {pipeline_mode = #tpu.pipeline_mode<synchronous>, transform_indices = @transform_2, window_bounds = array<i64: 56, 1>}, {pipeline_mode = #tpu.pipeline_mode<synchronous>, transform_indices = @transform_3, window_bounds = array<i64: 32, 16>}, {transform_indices = @transform_4, window_bounds = array<i64: 1, 32, 256>}]} {
    %c0 = arith.constant 0 : index
    %c0_0 = arith.constant 0 : index
    %0 = vector.load %arg2[%c0, %c0_0] : memref<24x32xf32, #tpu.memory_space<vmem>>, vector<24x32xf32>
    %c0_1 = arith.constant 0 : index
    %c0_2 = arith.constant 0 : index
    %1 = vector.load %arg3[%c0_1, %c0_2] : memref<56x1xf32, #tpu.memory_space<vmem>>, vector<56x1xf32>
    %2 = vector.extract_strided_slice %1 {offsets = [0, 0], sizes = [24, 1], strides = [1, 1]} : vector<56x1xf32> to vector<24x1xf32>
    %3 = vector.extract_strided_slice %1 {offsets = [24, 0], sizes = [32, 1], strides = [1, 1]} : vector<56x1xf32> to vector<32x1xf32>
    %c0_3 = arith.constant 0 : index
    %c0_4 = arith.constant 0 : index
    %4 = vector.load %arg4[%c0_3, %c0_4] : memref<32x16xf32, #tpu.memory_space<vmem>>, vector<32x16xf32>
    %c0_5 = arith.constant 0 : index
    %c0_6 = arith.constant 0 : index
    %c0_7 = arith.constant 0 : index
    %5 = vector.load %arg1[%c0_5, %c0_6, %c0_7] : memref<1x32x256xf32, #tpu.memory_space<vmem>>, vector<1x32x256xf32>
    %6 = vector.shape_cast %5 : vector<1x32x256xf32> to vector<32x256xf32>
    %cst = arith.constant dense<0.000000e+00> : vector<24x256xf32>
    %7 = tpu.matmul %0, %6, %cst {dimension_numbers = #tpu.dot_dimension_numbers<[1], [0], [0], [1], [0, 0, 1, 1], [], []>} : vector<24x32xf32>, vector<32x256xf32>, vector<24x256xf32> -> vector<24x256xf32>
    %8 = vector.broadcast %2 : vector<24x1xf32> to vector<24x256xf32>
    %9 = arith.addf %7, %8 : vector<24x256xf32>
    %10 = vector.extract_strided_slice %9 {offsets = [0, 0], sizes = [4, 256], strides = [1, 1]} : vector<24x256xf32> to vector<4x256xf32>
    %11 = vector.extract_strided_slice %9 {offsets = [4, 0], sizes = [4, 256], strides = [1, 1]} : vector<24x256xf32> to vector<4x256xf32>
    %12 = vector.extract_strided_slice %9 {offsets = [8, 0], sizes = [16, 256], strides = [1, 1]} : vector<24x256xf32> to vector<16x256xf32>
    %13 = vector.extract_strided_slice %11 {offsets = [0, 0], sizes = [4, 64], strides = [1, 1]} : vector<4x256xf32> to vector<4x64xf32>
    %14 = vector.extract_strided_slice %11 {offsets = [0, 64], sizes = [4, 64], strides = [1, 1]} : vector<4x256xf32> to vector<4x64xf32>
    %15 = arith.maximumf %13, %14 : vector<4x64xf32>
    %16 = vector.extract_strided_slice %11 {offsets = [0, 128], sizes = [4, 64], strides = [1, 1]} : vector<4x256xf32> to vector<4x64xf32>
    %17 = vector.extract_strided_slice %11 {offsets = [0, 192], sizes = [4, 64], strides = [1, 1]} : vector<4x256xf32> to vector<4x64xf32>
    %18 = arith.maximumf %16, %17 : vector<4x64xf32>
    %19 = arith.maximumf %15, %18 : vector<4x64xf32>
    %20 = vector.extract_strided_slice %12 {offsets = [0, 0], sizes = [16, 64], strides = [1, 1]} : vector<16x256xf32> to vector<16x64xf32>
    %21 = vector.extract_strided_slice %12 {offsets = [0, 64], sizes = [16, 64], strides = [1, 1]} : vector<16x256xf32> to vector<16x64xf32>
    %22 = arith.maximumf %20, %21 : vector<16x64xf32>
    %23 = vector.extract_strided_slice %12 {offsets = [0, 128], sizes = [16, 64], strides = [1, 1]} : vector<16x256xf32> to vector<16x64xf32>
    %24 = vector.extract_strided_slice %12 {offsets = [0, 192], sizes = [16, 64], strides = [1, 1]} : vector<16x256xf32> to vector<16x64xf32>
    %25 = arith.maximumf %23, %24 : vector<16x64xf32>
    %26 = arith.maximumf %22, %25 : vector<16x64xf32>
    %cst_8 = arith.constant dense<0.000000e+00> : vector<64x256xf32>
    %27 = tpu.matmul %19, %10, %cst_8 {dimension_numbers = #tpu.dot_dimension_numbers<[0], [0], [1], [1], [0, 1, 1, 1], [], []>} : vector<4x64xf32>, vector<4x256xf32>, vector<64x256xf32> -> vector<64x256xf32>
    %cst_9 = arith.constant dense<0xFF800000> : vector<64xf32>
    %28 = vector.multi_reduction <maximumf>, %27, %cst_9 [1] : vector<64x256xf32> to vector<64xf32>
    %29 = vector.shape_cast %28 : vector<64xf32> to vector<64x1xf32>
    %30 = vector.broadcast %29 : vector<64x1xf32> to vector<64x256xf32>
    %31 = arith.subf %27, %30 : vector<64x256xf32>
    %32 = math.exp %31 : vector<64x256xf32>
    %cst_10 = arith.constant dense<0.000000e+00> : vector<64xf32>
    %33 = vector.multi_reduction <add>, %32, %cst_10 [1] : vector<64x256xf32> to vector<64xf32>
    %34 = vector.shape_cast %33 : vector<64xf32> to vector<64x1xf32>
    %35 = tpu.reciprocal %34 {approx = true} : vector<64x1xf32> -> vector<64x1xf32>
    %36 = vector.broadcast %35 : vector<64x1xf32> to vector<64x256xf32>
    %37 = arith.mulf %32, %36 : vector<64x256xf32>
    %cst_11 = arith.constant dense<0.000000e+00> : vector<16x256xf32>
    %38 = tpu.matmul %26, %37, %cst_11 {dimension_numbers = #tpu.dot_dimension_numbers<[1], [0], [0], [1], [0, 0, 1, 1], [], []>} : vector<16x64xf32>, vector<64x256xf32>, vector<16x256xf32> -> vector<16x256xf32>
    %cst_12 = arith.constant dense<0.000000e+00> : vector<32x256xf32>
    %39 = tpu.matmul %4, %38, %cst_12 {dimension_numbers = #tpu.dot_dimension_numbers<[1], [0], [0], [1], [0, 0, 1, 1], [], []>} : vector<32x16xf32>, vector<16x256xf32>, vector<32x256xf32> -> vector<32x256xf32>
    %40 = vector.broadcast %3 : vector<32x1xf32> to vector<32x256xf32>
    %41 = arith.addf %39, %40 : vector<32x256xf32>
    %42 = arith.addf %6, %41 : vector<32x256xf32>
    %c0_13 = arith.constant 0 : index
    %c0_14 = arith.constant 0 : index
    %c0_15 = arith.constant 0 : index
    %43 = vector.load %arg5[%c0_13, %c0_14, %c0_15] : memref<1x32x256xf32, #tpu.memory_space<vmem>>, vector<1x32x256xf32>
    %44 = vector.shape_cast %43 : vector<1x32x256xf32> to vector<32x256xf32>
    %45 = vector.shape_cast %42 : vector<32x256xf32> to vector<1x32x256xf32>
    tpu.vector_store %arg5[%c0_13, %c0_14, %c0_15], %45 {strides = array<i32>} : memref<1x32x256xf32, #tpu.memory_space<vmem>>, vector<1x32x256xf32>,
    return
  }
  func.func @transform_0(%arg0: i32) -> (i32, i32, i32) {
    %c0_i32 = arith.constant 0 : i32
    %c0_i32_0 = arith.constant 0 : i32
    %c0_i32_1 = arith.constant 0 : i32
    return %arg0, %c0_i32, %c0_i32_0 : i32, i32, i32
  }
  func.func @transform_1(%arg0: i32) -> (i32, i32) {
    %c0_i32 = arith.constant 0 : i32
    %c0_i32_0 = arith.constant 0 : i32
    %c0_i32_1 = arith.constant 0 : i32
    return %c0_i32, %c0_i32_0 : i32, i32
  }
  func.func @transform_2(%arg0: i32) -> (i32, i32) {
    %c0_i32 = arith.constant 0 : i32
    %c0_i32_0 = arith.constant 0 : i32
    %c0_i32_1 = arith.constant 0 : i32
    return %c0_i32, %c0_i32_0 : i32, i32
  }
  func.func @transform_3(%arg0: i32) -> (i32, i32) {
    %c0_i32 = arith.constant 0 : i32
    %c0_i32_0 = arith.constant 0 : i32
    %c0_i32_1 = arith.constant 0 : i32
    return %c0_i32, %c0_i32_0 : i32, i32
  }
  func.func @transform_4(%arg0: i32) -> (i32, i32, i32) {
    %c0_i32 = arith.constant 0 : i32
    %c0_i32_0 = arith.constant 0 : i32
    %c0_i32_1 = arith.constant 0 : i32
    return %arg0, %c0_i32, %c0_i32_0 : i32, i32, i32
  }
}

</mosaic_0001>

<bundles_post_ra>
// kernel: self_attention_forward.1
= control target key start
LH: loop header
LB: loop body
LE: loop exit
PB: predicated region body
PF: predicated region fallthrough
CT: control target
= control target key end

     0   :  { %s1093_s15 = smov 0   ;;  %s1331_s0 = inlined_call_operand.vmem [shape: f32[2,32,256], index: 0, kind: input, shape index: {}]   ;;  %s1332_s1 = inlined_call_operand.vmem [shape: f32[24,32], index: 1, kind: input, shape index: {}]   ;;  %s1333_s2 = inlined_call_operand.vmem [shape: f32[56,1], index: 2, kind: input, shape index: {}]   ;;  %s1334_s3 = inlined_call_operand.vmem [shape: f32[32,16], index: 3, kind: input, shape index: {}]   ;;  %s1335_s4 = inlined_call_operand.vmem [shape: f32[2,32,256], index: 4, kind: output, shape index: {}]  }
   0x1 LB: > { %s936_s16 = sadd.s32 4294967295, %s1063_s15   ;;  %p940_p0 = scmp.ge.s32.totalorder %s1063_s15, 1  ;;  %s1063_s15 = sphi %s1093_s15, %s14_s15  }
   0x2   : > { %p162_p1 = scmp.lt.s32.totalorder %s1063_s15, 3 }
   0x4   : > { %p163_p2 = pnand %p940_p0, %p162_p1 }
   0x5   : > { %p188_p3 = scmp.lt.s32.totalorder (!%p163_p2), %s936_s16, 1  ;;  %v201_v0 = vld [vmem:[%s1333_s2] sm:$0xff] (!%p163_p2)  ;;  %v1065_v1 = vmov (!%p163_p2), 0.0   ;;  %v1066_v2 = vmov (!%p163_p2), 0   ;;  %vm235_vm0 = vcmask (!%p163_p2), 261120   ;;  %vm421_vm1 = vcmask (!%p163_p2), 1043456  }
   0x6   : > { %166 = sbr.rel (%p163_p2) target bundleno = 1549 (0x60d), region = 36  ;;  %309 = vmatprep.mubr.f32.mxu0 (!%p163_p2), %v1065_v1  ;;  %1007 = vset.pattern.permute.xlu0 (!%p163_p2), %v1066_v2  ;;  %v198_v15 = vld [vmem:[%s1332_s1] sm:$0xff] (!%p163_p2)  ;;  %s1067_s25 = smov (!%p163_p2), 64   ;;  %v199_v27 = vld [vmem:[%s1332_s1 + $0x8] sm:$0xff] (!%p163_p2)  ;;  %v200_v28 = vld [vmem:[%s1332_s1 + $0x10] sm:$0xff] (!%p163_p2)  ;;  %vm396_vm2 = vcmask (!%p163_p2), 31744  }
   0x7   : > { %222 = vperm.xlu0 (!%p163_p2), %1007, %v201_v0   ;;  %490 = vmatprep.mubr.f32.mxu1 (!%p163_p2), %v1065_v1  ;;  %v202_v61 = vld [vmem:[%s1333_s2 + $0x8] sm:$0xff] (!%p163_p2)  ;;  %v203_v0 = vld [vmem:[%s1333_s2 + $0x10] sm:$0xff] (!%p163_p2)  ;;  %vm659_vm3 = vcmask (!%p163_p2), 523264   ;;  %vm763_vm4 = vcmask (!%p163_p2), 130048  }
   0xd   : > { %s1337_s16 = smov (!%p188_p3, %s936_s16), 1 }
   0xe   : > { %s966_s19 = sshll.u32 %s1337_s16, 6 }
   0xf   : > { %s192_s22 = scalar_lea.vmem %s1331_s0, %s966_s19  ;;  %s1310_s29 = scalar_lea.vmem %s1335_s4, %s966_s19 }
  0x10   : > { %v1114_v3 = vld [vmem:[%s192_s22 + $0x8] sm:$0xff]  ;;  %v1116_v4 = vld [vmem:[%s192_s22 + $0x18] sm:$0xff]  ;;  %v1118_v5 = vld [vmem:[%s192_s22] sm:$0xff] }
  0x11   : > { %v968_v6 = vpack.c.bf16 %v1116_v4, %v1114_v3  ;;  %v1122_v7 = vld [vmem:[%s192_s22 + $0x10] sm:$0xff]  ;;  %v1124_v8 = vld [vmem:[%s192_s22 + $0x28] sm:$0xff]  ;;  %v1126_v9 = vld [vmem:[%s192_s22 + $0x38] sm:$0xff] }
  0x12   : > { %v970_v10 = vpack.c.bf16 %v1122_v7, %v1118_v5  ;;  %v972_v11 = vpack.c.bf16 %v1126_v9, %v1124_v8  ;;  %v1132_v12 = vld [vmem:[%s192_s22 + $0x20] sm:$0xff]  ;;  %v1134_v13 = vld [vmem:[%s192_s22 + $0x30] sm:$0xff] }
  0x13   : > { %969 = vmatprep.subr.bf16.mxu0 %v968_v6  ;;  %v974_v14 = vpack.c.bf16 %v1134_v13, %v1132_v12 }
  0x14   : > { %971 = vmatpush1.bf16.msra.mxu0 %v970_v10 }
  0x15   : > { %973 = vmatprep.subr.bf16.mxu0 %v972_v11 }
  0x18   : > { %975 = vmatpush1.bf16.msra.mxu0 %v974_v14 }
  0x1b   : > { %945 = vmatmul.mubr.msk.f32.vlgmr.msra.gmra.mrb[0].mxu0 %vm235_vm0, %v198_v15 }
  0x1c   : > { %315 = vmatprep.mubr.f32.mxu0 %v1065_v1 }
  0x1f   : > { %946 = vmatmul.mubr.msk.f32.gmra.mrb[2].mxu0 %vm235_vm0, %v199_v27 }
  0x20   : > { %321 = vmatprep.mubr.f32.mxu0 %v1065_v1 }
  0x23   : > { %947 = vmatmul.mubr.msk.f32.gmra.mrb[4].mxu0 %vm235_vm0, %v200_v28 }
  0x24   : > { %840 = vmatprep.mubr.f32.mxu0 %v1065_v1 }
  0x86   : > { %v223_v16 = vpop.permute.xlu0 %222 }
  0xee   : > { %v311_v17 = vpop.f32.mrb[0].mxu0 }
  0xef   : > { %v312_v18 = vadd.f32 %v311_v17, %v223_v16  ;;  %v313_v19 = vpop.f32.mrb[1].mxu0 }
  0xf0   : > { %v314_v20 = vadd.f32 %v313_v19, %v223_v16 }
  0xf1   : > { %329 = vrot.lane.b32.xlu0 %v312_v18, %s1067_s25 }
  0xf2   : > { %334 = vrot.lane.b32.xlu1 %v314_v20, %s1067_s25  ;;  %948 = vmatprep.subr.msk.mxu1 %vm421_vm1, %v314_v20  ;;  %v317_v62 = vpop.f32.mrb[2].mxu0 }
  0xf3   : > { %949 = vmatpush1.msk.msra.mxu1 %vm421_vm1, %v312_v18  ;;  %v1198_v63 = vpop.f32.mrb[3].mxu0 }
 0x163   : > { %v330_v21 = vpop.permute.xlu0 %329 }
 0x164   : > { %v332_v22 = vmax.f32 %v312_v18, %v330_v21  ;;  %v335_v23 = vpop.permute.xlu1 %334 }
 0x165   : > { %v337_v24 = vmax.f32 %v314_v20, %v335_v23 }
 0x167   : > { %v338_v25 = vmax.f32 %v332_v22, %v337_v24 }
 0x169   : > { %v362_v26 = vrot.slane %v338_v25, 4 }
 0x16b   : > { %364 = vxpose.xlu1.b32.start.end [1/1] (short) (narrow) %v362_v26, 64 }
 0x189   : > { %1008 = vset.pattern.permute.xlu1 %v1066_v2  ;;  %v1203_v2 = vpop.f32.mrb[4].mxu0 }
 0x18a   : > { %v1205_v6 = vpop.f32.mrb[5].mxu0 }
 0x1eb   : > { %v380_v29 = vpop.trf.xlu1 }
 0x1ec   : > { %950 = vmatmul.mubr.msk.f32.vlgmr.msra.gmra.mrb[0].mxu1 %vm396_vm2, %v380_v29 }
 0x1ed   : > { %496 = vmatprep.mubr.f32.mxu1 %v1065_v1 }
 0x1ef   : > { %v381_v30 = vpop.trf.xlu1 }
 0x1f0   : > { %951 = vmatmul.mubr.msk.f32.gmra.mrb[2].mxu1 %vm396_vm2, %v381_v30 }
 0x1f1   : > { %502 = vmatprep.mubr.f32.mxu1 %v1065_v1 }
 0x1f3   : > { %v382_v31 = vpop.trf.xlu1 }
 0x1f4   : > { %952 = vmatmul.mubr.msk.f32.gmra.mrb[4].mxu1 %vm396_vm2, %v382_v31 }
 0x1f5   : > { %508 = vmatprep.mubr.f32.mxu1 %v1065_v1 }
 0x1f7   : > { %v383_v32 = vpop.trf.xlu1 }
 0x1f8   : > { %953 = vmatmul.mubr.msk.f32.gmra.mrb[6].mxu1 %vm396_vm2, %v383_v32 }
 0x1f9   : > { %514 = vmatprep.mubr.f32.mxu1 %v1065_v1 }
 0x1fb   : > { %v384_v33 = vpop.trf.xlu1 }
 0x1fc   : > { %954 = vmatmul.mubr.msk.f32.gmra.mrb[8].mxu1 %vm396_vm2, %v384_v33 }
 0x1fd   : > { %520 = vmatprep.mubr.f32.mxu1 %v1065_v1 }
 0x1ff   : > { %v385_v34 = vpop.trf.xlu1 }
 0x200   : > { %955 = vmatmul.mubr.msk.f32.gmra.mrb[10].mxu1 %vm396_vm2, %v385_v34 }
 0x201   : > { %526 = vmatprep.mubr.f32.mxu1 %v1065_v1 }
 0x203   : > { %v386_v35 = vpop.trf.xlu1 }
 0x204   : > { %956 = vmatmul.mubr.msk.f32.gmra.mrb[12].mxu1 %vm396_vm2, %v386_v35 }
 0x205   : > { %532 = vmatprep.mubr.f32.mxu1 %v1065_v1 }
 0x207   : > { %v387_v36 = vpop.trf.xlu1 }
 0x208   : > { %957 = vmatmul.mubr.msk.f32.gmra.mrb[14].mxu1 %vm396_vm2, %v387_v36 }
 0x209   : > { %730 = vmatprep.mubr.f32.mxu1 %v1065_v1 }
 0x2bf   : > { %v492_v37 = vpop.f32.mrb[0].mxu1 }
 0x2c0   : > { %v494_v38 = vpop.f32.mrb[1].mxu1 }
 0x2c1   : > { %v539_v39 = vmax.f32 %v492_v37, %v494_v38 }
 0x2c3   : > { %540 = vmax.xlane.f32.xlu0 %v539_v39  ;;  %v1171_v40 = vpop.f32.mrb[2].mxu1 }
 0x2c4   : > { %v1173_v41 = vpop.f32.mrb[3].mxu1 }
 0x2c5   : > { %v542_v42 = vmax.f32 %v1171_v40, %v1173_v41 }
 0x2c7   : > { %543 = vmax.xlane.f32.xlu0 %v542_v42  ;;  %v1177_v43 = vpop.f32.mrb[4].mxu1 }
 0x2c8   : > { %v1179_v44 = vpop.f32.mrb[5].mxu1 }
 0x2c9   : > { %v545_v45 = vmax.f32 %v1177_v43, %v1179_v44 }
 0x2cb   : > { %546 = vmax.xlane.f32.xlu0 %v545_v45  ;;  %v510_v46 = vpop.f32.mrb[6].mxu1 }
 0x2cc   : > { %v512_v47 = vpop.f32.mrb[7].mxu1 }
 0x2cd   : > { %v548_v48 = vmax.f32 %v510_v46, %v512_v47 }
 0x2cf   : > { %549 = vmax.xlane.f32.xlu1 %v548_v48  ;;  %v1183_v49 = vpop.f32.mrb[8].mxu1 }
 0x2d0   : > { %v1185_v50 = vpop.f32.mrb[9].mxu1 }
 0x2d1   : > { %v551_v51 = vmax.f32 %v1183_v49, %v1185_v50 }
 0x2d3   : > { %552 = vmax.xlane.f32.xlu0 %v551_v51  ;;  %v522_v52 = vpop.f32.mrb[10].mxu1 }
 0x2d4   : > { %v524_v53 = vpop.f32.mrb[11].mxu1 }
 0x2d5   : > { %v554_v54 = vmax.f32 %v522_v52, %v524_v53 }
 0x2d7   : > { %555 = vmax.xlane.f32.xlu0 %v554_v54  ;;  %v1189_v55 = vpop.f32.mrb[12].mxu1 }
 0x2d8   : > { %v1191_v56 = vpop.f32.mrb[13].mxu1 }
 0x2d9   : > { %v557_v57 = vmax.f32 %v1189_v55, %v1191_v56 }
 0x2db   : > { %558 = vmax.xlane.f32.xlu0 %v557_v57  ;;  %v534_v58 = vpop.f32.mrb[14].mxu1 }
 0x2dc   : > { %v536_v59 = vpop.f32.mrb[15].mxu1 }
 0x2dd   : > { %v560_v60 = vmax.f32 %v534_v58, %v536_v59 }
 0x2df   : > { %561 = vmax.xlane.f32.xlu0 %v560_v60 }
 0x2f5   : > { %227 = vperm.xlu0 %1007, %v202_v61  }
 0x2f9   : > { %232 = vperm.xlu0 %1007, %v203_v0  }
 0x350   : > { %v541_v10 = vpop.xlane.xlu0 %540 }
 0x351   : > { %v563_v11 = vsub.f32 %v492_v37, %v541_v10  ;;  %v564_v14 = vsub.f32 %v494_v38, %v541_v10 }
 0x353   : > { %v579_v15 = vmul.f32 1.442695, %v563_v11  ;;  %v581_v16 = vmul.f32 1.442695, %v564_v14 }
 0x354   : > { %v544_v17 = vpop.xlane.xlu0 %543 }
 0x355   : > { %1009 = vpow2.f32 %v579_v15 }
 0x356   : > { %1011 = vpow2.f32 %v581_v16 }
 0x358   : > { %v547_v18 = vpop.xlane.xlu0 %546 }
 0x359   : > { %v567_v61 = vsub.f32 %v1177_v43, %v547_v18  ;;  %v568_v0 = vsub.f32 %v1179_v44, %v547_v18 }
 0x35b   : > { %v587_v10 = vmul.f32 1.442695, %v567_v61  ;;  %v589_v14 = vmul.f32 1.442695, %v568_v0 }
 0x35c   : > { %v550_v19 = vpop.xlane.xlu1 %549 }
 0x35d   : > { %v569_v20 = vsub.f32 %v510_v46, %v550_v19  ;;  %v570_v21 = vsub.f32 %v512_v47, %v550_v19 }
 0x35f   : > { %v1207_v22 = vpop.eup %1009  ;;  %v591_v23 = vmul.f32 1.442695, %v569_v20  ;;  %v593_v24 = vmul.f32 1.442695, %v570_v21 }
 0x360   : > { %v1209_v25 = vpop.eup %1011  ;;  %v553_v26 = vpop.xlane.xlu0 %552 }
 0x361   : > { %1013 = vpow2.f32 %v591_v23  ;;  %v611_v27 = vadd.f32 %v1209_v25, %v1207_v22  ;;  %v571_v11 = vsub.f32 %v1183_v49, %v553_v26  ;;  %v572_v15 = vsub.f32 %v1185_v50, %v553_v26 }
 0x362   : > { %1015 = vpow2.f32 %v593_v24 }
 0x363   : > { %612 = vadd.xlane.f32.xlu0 %v611_v27  ;;  %v595_v16 = vmul.f32 1.442695, %v571_v11 }
 0x364   : > { %v556_v28 = vpop.xlane.xlu0 %555 }
 0x365   : > { %v573_v29 = vsub.f32 %v522_v52, %v556_v28  ;;  %v574_v30 = vsub.f32 %v524_v53, %v556_v28 }
 0x367   : > { %v599_v31 = vmul.f32 1.442695, %v573_v29  ;;  %v601_v32 = vmul.f32 1.442695, %v574_v30 }
 0x368   : > { %v559_v33 = vpop.xlane.xlu0 %558 }
 0x369   : > { %1017 = vpow2.f32 %v599_v31 }
 0x36a   : > { %1019 = vpow2.f32 %v601_v32 }
 0x36b   : > { %v1213_v34 = vpop.eup %1013 }
 0x36c   : > { %v1215_v35 = vpop.eup %1015  ;;  %v562_v36 = vpop.xlane.xlu0 %561 }
 0x36d   : > { %v577_v37 = vsub.f32 %v534_v58, %v562_v36  ;;  %v578_v38 = vsub.f32 %v536_v59, %v562_v36  ;;  %v620_v39 = vadd.f32 %v1215_v35, %v1213_v34  ;;  %v565_v58 = vsub.f32 %v1171_v40, %v544_v17 }
 0x36e   : > { %v566_v59 = vsub.f32 %v1173_v41, %v544_v17  ;;  %v575_v40 = vsub.f32 %v1189_v55, %v559_v33  ;;  %v597_v41 = vmul.f32 1.442695, %v572_v15  ;;  %v576_v17 = vsub.f32 %v1191_v56, %v559_v33  ;;  %v205_v55 = vld [vmem:[%s1333_s2 + $0x20] sm:$0xff] }
 0x36f   : > { %v607_v42 = vmul.f32 1.442695, %v577_v37  ;;  %v609_v45 = vmul.f32 1.442695, %v578_v38  ;;  %621 = vadd.xlane.f32.xlu0 %v620_v39  ;;  %v583_v60 = vmul.f32 1.442695, %v565_v58 }
 0x370   : > { %v603_v43 = vmul.f32 1.442695, %v575_v40  ;;  %v605_v18 = vmul.f32 1.442695, %v576_v17 }
 0x371   : > { %1021 = vpow2.f32 %v607_v42 }
 0x372   : > { %1023 = vpow2.f32 %v609_v45 }
 0x373   : > { %v1219_v46 = vpop.eup %1017  ;;  %1025 = vpow2.f32 %v583_v60 }
 0x374   : > { %v1221_v47 = vpop.eup %1019  ;;  %v228_v48 = vpop.permute.xlu0 %227 }
 0x375   : > { %v1223_v51 = vadd.f32 %v317_v62, %v228_v48  ;;  %v626_v52 = vadd.f32 %v1221_v47, %v1219_v46  ;;  %v585_v62 = vmul.f32 1.442695, %v566_v59  ;;  %v1244_v44 = vadd.f32 %v1198_v63, %v228_v48  ;;  %v207_v63 = vld [vmem:[%s1333_s2 + $0x30] sm:$0xff] }
 0x377   : > { %627 = vadd.xlane.f32.xlu0 %v626_v52  ;;  %341 = vrot.lane.b32.xlu1 %v1223_v51, %s1067_s25  ;;  %1027 = vpow2.f32 %v585_v62 }
 0x378   : > { %1029 = vpow2.f32 %v587_v10  ;;  %v233_v30 = vpop.permute.xlu0 %232 }
 0x379   : > { %1031 = vpow2.f32 %v589_v14  ;;  %v1258_v31 = vadd.f32 %v1203_v2, %v233_v30  ;;  %v1263_v32 = vadd.f32 %v1205_v6, %v233_v30 }
 0x37a   : > { %1033 = vpow2.f32 %v595_v16 }
 0x37b   : > { %v1229_v53 = vpop.eup %1021  ;;  %1035 = vpow2.f32 %v597_v41 }
 0x37c   : > { %v1231_v54 = vpop.eup %1023  ;;  %1037 = vpow2.f32 %v603_v43 }
 0x37d   : > { %v632_v57 = vadd.f32 %v1231_v54, %v1229_v53  ;;  %v1026_v49 = vpop.eup %1025  ;;  %1039 = vpow2.f32 %v605_v18 }
 0x37f   : > { %633 = vadd.xlane.f32.xlu0 %v632_v57 }
 0x381   : > { %v1028_v50 = vpop.eup %1027 }
 0x382   : > { %v1030_v19 = vpop.eup %1029  ;;  %v614_v56 = vadd.f32 %v1028_v50, %v1026_v49 }
 0x383   : > { %v1032_v20 = vpop.eup %1031 }
 0x384   : > { %v1034_v21 = vpop.eup %1033  ;;  %v617_v23 = vadd.f32 %v1032_v20, %v1030_v19 }
 0x385   : > { %v1036_v24 = vpop.eup %1035 }
 0x386   : > { %v1254_v26 = vpop.eup %1037  ;;  %v623_v27 = vadd.f32 %v1036_v24, %v1034_v21 }
 0x387   : > { %v1040_v28 = vpop.eup %1039 }
 0x388   : > { %v629_v29 = vadd.f32 %v1040_v28, %v1254_v26 }
 0x395   : > { %351 = vrot.lane.b32.xlu0 %v1244_v44, %s1067_s25 }
 0x399   : > { %750 = vperm.xlu0 %1007, %v205_v55  }
 0x39b   : > { %615 = vadd.xlane.f32.xlu1 %v614_v56 }
 0x39d   : > { %760 = vperm.xlu0 %1007, %v207_v63  }
 0x39f   : > { %618 = vadd.xlane.f32.xlu1 %v617_v23 }
 0x3a3   : > { %624 = vadd.xlane.f32.xlu1 %v623_v27 }
 0x3a7   : > { %630 = vadd.xlane.f32.xlu1 %v629_v29 }
 0x3b8   : > { %343 = vrot.lane.b32.xlu1 %v1258_v31, %s1067_s25 }
 0x3bc   : > { %353 = vrot.lane.b32.xlu1 %v1263_v32, %s1067_s25 }
 0x3e9   : > { %v1267_v33 = vpop.permute.xlu1 %341 }
 0x3ea   : > { %v347_v29 = vmax.f32 %v1223_v51, %v1267_v33  ;;  %v206_v51 = vld [vmem:[%s1333_s2 + $0x28] sm:$0xff] }
 0x3f0   : > { %v613_v36 = vpop.xlane.xlu0 %612 }
 0x3f1   : > { %1041 = vrcp.f32 %v613_v36 }
 0x3fb   : > { %v1042_v48 = vpop.eup %1041 }
 0x3fc   : > { %v622_v37 = vpop.xlane.xlu0 %621  ;;  %v644_v57 = vmul.f32 %v1042_v48, %v1209_v25  ;;  %v643_v59 = vmul.f32 %v1042_v48, %v1207_v22 }
 0x404   : > { %v628_v39 = vpop.xlane.xlu0 %627 }
 0x40c   : > { %v634_v42 = vpop.xlane.xlu0 %633 }
 0x428   : > { %v616_v38 = vpop.xlane.xlu1 %615 }
 0x429   : > { %1043 = vrcp.f32 %v616_v38  ;;  %v208_v38 = vld [vmem:[%s1334_s3] sm:$0xff] }
 0x42a   : > { %1045 = vrcp.f32 %v622_v37 }
 0x42c   : > { %v619_v2 = vpop.xlane.xlu1 %618 }
 0x42d   : > { %1047 = vrcp.f32 %v619_v2  ;;  %v210_v2 = vld [vmem:[%s1334_s3 + $0x10] sm:$0xff] }
 0x42e   : > { %1049 = vrcp.f32 %v628_v39  ;;  %v209_v39 = vld [vmem:[%s1334_s3 + $0x8] sm:$0xff] }
 0x430   : > { %v625_v45 = vpop.xlane.xlu1 %624 }
 0x431   : > { %1051 = vrcp.f32 %v625_v45 }
 0x432   : > { %1053 = vrcp.f32 %v634_v42  ;;  %v211_v42 = vld [vmem:[%s1334_s3 + $0x18] sm:$0xff] }
 0x433   : > { %v1044_v6 = vpop.eup %1043 }
 0x434   : > { %v631_v52 = vpop.xlane.xlu1 %630  ;;  %v646_v58 = vmul.f32 %v1044_v6, %v1028_v50  ;;  %v645_v60 = vmul.f32 %v1044_v6, %v1026_v49  ;;  %v1046_v61 = vpop.eup %1045 }
 0x435   : > { %1055 = vrcp.f32 %v631_v52  ;;  %v650_v14 = vmul.f32 %v1046_v61, %v1215_v35  ;;  %v649_v16 = vmul.f32 %v1046_v61, %v1213_v34 }
 0x436   : > { %v976_v62 = vpack.c.bf16 %v646_v58, %v644_v57  ;;  %v978_v0 = vpack.c.bf16 %v645_v60, %v643_v59 }
 0x437   : > { %v1048_v10 = vpop.eup %1047 }
 0x438   : > { %977 = vmatprep.subr.bf16.mxu1 %v976_v62  ;;  %v648_v11 = vmul.f32 %v1048_v10, %v1032_v20  ;;  %v647_v15 = vmul.f32 %v1048_v10, %v1030_v19  ;;  %v1050_v40 = vpop.eup %1049  ;;  %v344_v55 = vpop.permute.xlu1 %343 }
 0x439   : > { %979 = vmatpush1.bf16.msra.mxu1 %v978_v0  ;;  %v654_v43 = vmul.f32 %v1050_v40, %v1221_v47  ;;  %v653_v49 = vmul.f32 %v1050_v40, %v1219_v46  ;;  %v352_v20 = vpop.permute.xlu0 %351 }
 0x43a   : > { %v980_v41 = vpack.c.bf16 %v650_v14, %v648_v11  ;;  %v982_v25 = vpack.c.bf16 %v649_v16, %v647_v15  ;;  %v357_v47 = vmax.f32 %v1244_v44, %v352_v20  ;;  %v204_v44 = vld [vmem:[%s1333_s2 + $0x18] sm:$0xff] }
 0x43b   : > { %v1052_v17 = vpop.eup %1051  ;;  %745 = vperm.xlu1 %1008, %v204_v44  }
 0x43c   : > { %981 = vmatprep.subr.bf16.mxu1 %v980_v41  ;;  %v652_v22 = vmul.f32 %v1052_v17, %v1036_v24  ;;  %v651_v18 = vmul.f32 %v1052_v17, %v1034_v21  ;;  %v1054_v50 = vpop.eup %1053  ;;  %v354_v27 = vpop.permute.xlu1 %353  ;;  %v359_v30 = vmax.f32 %v347_v29, %v357_v47 }
 0x43d   : > { %983 = vmatpush1.bf16.msra.mxu1 %v982_v25  ;;  %v658_v63 = vmul.f32 %v1054_v50, %v1231_v54  ;;  %v657_v24 = vmul.f32 %v1054_v50, %v1229_v53  ;;  %v348_v54 = vmax.f32 %v1258_v31, %v344_v55  ;;  %v751_v58 = vpop.permute.xlu0 %750 }
 0x43e   : > { %v984_v56 = vpack.c.bf16 %v654_v43, %v652_v22  ;;  %v986_v35 = vpack.c.bf16 %v653_v49, %v651_v18 }
 0x43f   : > { %v1056_v19 = vpop.eup %1055  ;;  %755 = vperm.xlu1 %1008, %v206_v51  }
 0x440   : > { %985 = vmatprep.subr.bf16.mxu1 %v984_v56  ;;  %v656_v34 = vmul.f32 %v1056_v19, %v1040_v28  ;;  %v655_v23 = vmul.f32 %v1056_v19, %v1254_v26  ;;  %v358_v28 = vmax.f32 %v1263_v32, %v354_v27 }
 0x441   : > { %987 = vmatpush1.bf16.msra.mxu1 %v986_v35  ;;  %v761_v41 = vpop.permute.xlu0 %760 }
 0x442   : > { %v988_v21 = vpack.c.bf16 %v658_v63, %v656_v34  ;;  %v990_v46 = vpack.c.bf16 %v657_v24, %v655_v23  ;;  %v360_v53 = vmax.f32 %v348_v54, %v358_v28 }
 0x444   : > { %989 = vmatprep.subr.bf16.mxu1 %v988_v21 }
 0x445   : > { %991 = vmatpush1.bf16.msra.mxu1 %v990_v46 }
 0x448   : > { %958 = vmatmul.mubr.msk.f32.vlgmr.msra.gmra.mrb[16].mxu1 %vm659_vm3, %v359_v30 }
 0x449   : > { %736 = vmatprep.mubr.f32.mxu1 %v1065_v1 }
 0x44c   : > { %959 = vmatmul.mubr.msk.f32.gmra.mrb[18].mxu1 %vm659_vm3, %v360_v53 }
 0x4ba   : > { %v746_v45 = vpop.permute.xlu1 %745 }
 0x4be   : > { %v756_v10 = vpop.permute.xlu1 %755 }
 0x51b   : > { %v732_v26 = vpop.f32.mrb[16].mxu1 }
 0x51c   : > { %v734_v33 = vpop.f32.mrb[17].mxu1 }
 0x51f   : > { %v738_v32 = vpop.f32.mrb[18].mxu1 }
 0x520   : > { %v994_v36 = vpack.c.bf16 %v738_v32, %v732_v26  ;;  %v740_v31 = vpop.f32.mrb[19].mxu1 }
 0x521   : > { %v992_v37 = vpack.c.bf16 %v740_v31, %v734_v33 }
 0x523   : > { %993 = vmatprep.subr.bf16.mxu0 %v992_v37 }
 0x524   : > { %995 = vmatpush1.bf16.msra.mxu0 %v994_v36 }
 0x527   : > { %960 = vmatmul.mubr.msk.f32.vlgmr.msra.gmra.mrb[6].mxu0 %vm763_vm4, %v208_v38 }
 0x528   : > { %846 = vmatprep.mubr.f32.mxu0 %v1065_v1 }
 0x52b   : > { %961 = vmatmul.mubr.msk.f32.gmra.mrb[8].mxu0 %vm763_vm4, %v209_v39 }
 0x52c   : > { %852 = vmatprep.mubr.f32.mxu0 %v1065_v1 }
 0x52f   : > { %962 = vmatmul.mubr.msk.f32.gmra.mrb[10].mxu0 %vm763_vm4, %v210_v2 }
 0x530   : > { %858 = vmatprep.mubr.f32.mxu0 %v1065_v1 }
 0x533   : > { %963 = vmatmul.mubr.msk.f32.gmra.mrb[12].mxu0 %vm763_vm4, %v211_v42 }
 0x5fa   : > { %v842_v48 = vpop.f32.mrb[6].mxu0 }
 0x5fb   : > { %v844_v6 = vpop.f32.mrb[7].mxu0  ;;  %v843_v52 = vadd.f32 %v842_v48, %v746_v45 }
 0x5fc   : > { %v845_v57 = vadd.f32 %v844_v6, %v746_v45 }
 0x5fd   : > { %v865_v1 = vadd.f32 %v843_v52, %v1118_v5 }
 0x5fe   : > { %v848_v59 = vpop.f32.mrb[8].mxu0  ;;  %v866_v60 = vadd.f32 %v845_v57, %v1114_v3 }
 0x5ff   : > { %v849_v61 = vadd.f32 %v848_v59, %v751_v58  ;;  %v850_v62 = vpop.f32.mrb[9].mxu0  ;;  %873 = vst [vmem:[%s1310_s29] sm:$0xff] %v865_v1 }
 0x600   : > { %v851_v0 = vadd.f32 %v850_v62, %v751_v58  ;;  %874 = vst [vmem:[%s1310_s29 + $0x8] sm:$0xff] %v866_v60 }
 0x601   : > { %v867_v11 = vadd.f32 %v849_v61, %v1122_v7 }
 0x602   : > { %v868_v14 = vadd.f32 %v851_v0, %v1116_v4  ;;  %v854_v15 = vpop.f32.mrb[10].mxu0 }
 0x603   : > { %875 = vst [vmem:[%s1310_s29 + $0x10] sm:$0xff] %v867_v11  ;;  %v856_v5 = vpop.f32.mrb[11].mxu0  ;;  %v855_v16 = vadd.f32 %v854_v15, %v756_v10 }
 0x604   : > { %876 = vst [vmem:[%s1310_s29 + $0x18] sm:$0xff] %v868_v14  ;;  %v857_v3 = vadd.f32 %v856_v5, %v756_v10 }
 0x605   : > { %v869_v40 = vadd.f32 %v855_v16, %v1132_v12 }
 0x606   : > { %v860_v25 = vpop.f32.mrb[12].mxu0  ;;  %v870_v17 = vadd.f32 %v857_v3, %v1124_v8 }
 0x607   : > { %v861_v22 = vadd.f32 %v860_v25, %v761_v41  ;;  %v862_v43 = vpop.f32.mrb[13].mxu0  ;;  %877 = vst [vmem:[%s1310_s29 + $0x20] sm:$0xff] %v869_v40 }
 0x608   : > { %v863_v7 = vadd.f32 %v862_v43, %v761_v41  ;;  %878 = vst [vmem:[%s1310_s29 + $0x28] sm:$0xff] %v870_v17 }
 0x609   : > { %v871_v4 = vadd.f32 %v861_v22, %v1134_v13 }
 0x60a   : > { %v872_v18 = vadd.f32 %v863_v7, %v1126_v9 }
 0x60b   : > { %879 = vst [vmem:[%s1310_s29 + $0x30] sm:$0xff] %v871_v4 }
 0x60c   : > { %880 = vst [vmem:[%s1310_s29 + $0x38] sm:$0xff] %v872_v18 }
 0x60d PF: > { %s14_s15 = sadd.s32 1, %s1063_s15  }
 0x60e   : > { %p11_p4 = scmp.ge.s32.totalorder %s14_s15, 4  }
 0x610   :  { %13 = sbr.rel (!%p11_p4) target bundleno = 1 (0x1), region = 66 }

</bundles_post_ra>
